<compile_context>
chip_gen: v7x
topology: tpu7x:2x2x1
jax: 0.10.0
libtpu: 0.0.40
codegen_flags: <defaults>
</compile_context>

<pallas_src>
import jax
import jax.numpy as jnp
from jax.experimental import pallas as pl
from jax.experimental.pallas import tpu as pltpu

LANE = 128      # vreg lane width
SUBLANE = 8     # f32 sublane count


def _round_up(v, m):
    return ((v + m - 1) // m) * m


# ---------------------------------------------------------------------------
# Fused Pallas kernel: (x @ W1 + b1) -> ReLU -> (@ W2 + b2)
# Emits fc1 pre-activation, relu1 activation, and fc2 output (all captured
# by the corresponding hooks).
# ---------------------------------------------------------------------------
def _fused_mlp_kernel(x_ref, w1_ref, b1_ref, w2_ref, b2_ref,
                      fc1_ref, relu1_ref, fc2_ref):
    # First linear on the MXU, f32 accumulation.
    y1 = jnp.dot(x_ref[...], w1_ref[...], preferred_element_type=jnp.float32)
    y1 = y1 + b1_ref[...]                     # (1, Hp) bias broadcast, one vreg
    r1 = jnp.maximum(y1, 0.0)                 # f32 epilogue (v5e-safe)
    fc1_ref[...] = y1.astype(fc1_ref.dtype)
    relu1_ref[...] = r1.astype(relu1_ref.dtype)
    # Second linear, still inside the same kernel (no HBM round-trip).
    y2 = jnp.dot(r1.astype(w2_ref.dtype), w2_ref[...],
                 preferred_element_type=jnp.float32)
    fc2_ref[...] = (y2 + b2_ref[...]).astype(fc2_ref.dtype)


def fused_mlp(xf, w1p, b1p, w2p, b2p, *, tm):
    """xf:[Mp,K] (Mp % tm == 0), w1p:[K,Hp], b1p:[1,Hp], w2p:[Hp,Np], b2p:[1,Np]
    -> (fc1 [Mp,Hp], relu1 [Mp,Hp], fc2 [Mp,Np]); Hp/Np are 128-lane padded."""
    Mp, K = xf.shape
    Hp = w1p.shape[1]
    Np = w2p.shape[1]
    grid_m = Mp // tm

    return pl.pallas_call(
        _fused_mlp_kernel,
        grid=(grid_m,),
        in_specs=[
            pl.BlockSpec((tm, K), lambda i: (i, 0)),    # x tile (pipelined over M)
            pl.BlockSpec((K, Hp), lambda i: (0, 0)),    # W1 resident
            pl.BlockSpec((1, Hp), lambda i: (0, 0)),    # b1 (one full vreg row)
            pl.BlockSpec((Hp, Np), lambda i: (0, 0)),   # W2 resident
            pl.BlockSpec((1, Np), lambda i: (0, 0)),    # b2
        ],
        out_specs=(
            pl.BlockSpec((tm, Hp), lambda i: (i, 0)),   # fc1  (lane-dense, 128)
            pl.BlockSpec((tm, Hp), lambda i: (i, 0)),   # relu1
            pl.BlockSpec((tm, Np), lambda i: (i, 0)),   # fc2
        ),
        out_shape=(
            jax.ShapeDtypeStruct((Mp, Hp), jnp.float32),
            jax.ShapeDtypeStruct((Mp, Hp), jnp.float32),
            jax.ShapeDtypeStruct((Mp, Np), jnp.float32),
        ),
        compiler_params=pltpu.CompilerParams(
            # M axis is independent per tile -> shard across TCs on v7x.
            dimension_semantics=("parallel",),
            vmem_limit_bytes=32 * 1024 * 1024,
        ),
    )(xf, w1p, b1p, w2p, b2p)


# ---------------------------------------------------------------------------
# ActivationExtractor: runs the wrapped model, returns {layer_name: activation}
# ---------------------------------------------------------------------------
class ActivationExtractor:
    """JAX/Pallas analogue of the PyTorch ActivationExtractor.

    Wraps the model (Flatten -> fc1 -> relu1 -> fc2) and, like the
    forward-hook based original, returns a dict of every named module's
    output ("" is the root module, i.e. the final model output).
    """

    def __init__(self, params, layers=None, max_tile_m=256):
        all_layers = ["", "flatten", "fc1", "relu1", "fc2"]
        self.layers = all_layers if layers is None else layers
        self.max_tile_m = max_tile_m

        w1 = params["w1"]          # [in, hidden]
        b1 = params["b1"]          # [1, hidden]
        w2 = params["w2"]          # [hidden, out]
        b2 = params["b2"]          # [1, out]
        self.in_features = w1.shape[0]
        self.hidden = w1.shape[1]
        self.n_out = w2.shape[1]

        # Zero-pad the feature dims to 128 lanes ONCE, so every kernel store
        # is an unmasked full-vreg vst.  Zero padding keeps the padded
        # hidden columns exactly 0 through the ReLU and thus inert in fc2.
        Hp = _round_up(self.hidden, LANE)
        Np = _round_up(self.n_out, LANE)
        self.Hp, self.Np = Hp, Np
        self.w1p = jnp.zeros((self.in_features, Hp), jnp.float32).at[:, :self.hidden].set(w1)
        self.b1p = jnp.zeros((1, Hp), jnp.float32).at[:, :self.hidden].set(b1)
        self.w2p = jnp.zeros((Hp, Np), jnp.float32).at[:self.hidden, :self.n_out].set(w2)
        self.b2p = jnp.zeros((1, Np), jnp.float32).at[:, :self.n_out].set(b2)

    def __call__(self, x):
        b, c, h, w = x.shape
        xf = x.reshape(b, c * h * w)                 # Flatten (glue, matches torch.flatten(x,1))

        # Pad batch to a sublane-aligned tile: tm is a multiple of 8 and
        # capped so double-buffered x tiles fit v7x's 64 MiB VMEM.
        tm = min(self.max_tile_m, _round_up(b, SUBLANE))
        Mp = _round_up(b, tm)
        xfp = jnp.zeros((Mp, xf.shape[1]), jnp.float32).at[:b].set(xf)

        fc1_p, relu1_p, fc2_p = fused_mlp(
            xfp, self.w1p, self.b1p, self.w2p, self.b2p, tm=tm)

        # Slice padded rows/columns back to the logical hook shapes.
        fc1_out = fc1_p[:b, :self.hidden]
        relu1_out = relu1_p[:b, :self.hidden]
        fc2_out = fc2_p[:b, :self.n_out]

        activations = {
            "": fc2_out,         # root module hook -> model output
            "flatten": xf,
            "fc1": fc1_out,
            "relu1": relu1_out,
            "fc2": fc2_out,
        }
        return {k: v for k, v in activations.items() if k in self.layers}


def init_params(key, in_features, hidden, out_features):
    """Deterministic parameter init; weights follow PyTorch Linear (out,in)
    convention and are transposed to (in,out) for the kernel."""
    k1, k2, k3, k4 = jax.random.split(key, 4)
    w1_t = jax.random.normal(k1, (hidden, in_features), jnp.float32) * 0.02
    b1 = jax.random.normal(k2, (hidden,), jnp.float32) * 0.02
    w2_t = jax.random.normal(k3, (out_features, hidden), jnp.float32) * 0.02
    b2 = jax.random.normal(k4, (out_features,), jnp.float32) * 0.02
    return {
        "w1": w1_t.T,                      # [in, hidden]
        "b1": b1.reshape(1, hidden),       # [1, hidden]
        "w2": w2_t.T,                      # [hidden, out]
        "b2": b2.reshape(1, out_features), # [1, out]
    }


if __name__ == "__main__":
    key = jax.random.PRNGKey(0)
    kx, kp = jax.random.split(key)

    B, C, H, W = 2, 4, 16, 16
    hidden, n_out = 32, 10
    x = jax.random.normal(kx, (B, C, H, W), jnp.float32)

    params = init_params(kp, C * H * W, hidden, n_out)
    extractor = ActivationExtractor(params)

    activations = extractor(x)
    activations = jax.block_until_ready(activations)

    # Sanity: reference check against plain-JAX math.
    xf = x.reshape(B, -1)
    ref_fc1 = xf @ params["w1"] + params["b1"]
    ref_relu1 = jnp.maximum(ref_fc1, 0.0)
    ref_fc2 = ref_relu1 @ params["w2"] + params["b2"]
    assert activations["fc1"].shape == (B, hidden)
    assert activations["relu1"].shape == (B, hidden)
    assert activations["fc2"].shape == (B, n_out)
    assert activations["flatten"].shape == (B, C * H * W)
    assert jnp.allclose(activations["fc1"], ref_fc1, atol=1e-4)
    assert jnp.allclose(activations["relu1"], ref_relu1, atol=1e-4)
    assert jnp.allclose(activations["fc2"], ref_fc2, atol=1e-4)
    assert jnp.allclose(activations[""], ref_fc2, atol=1e-4)

    print("KERNEL_OK")
</pallas_src>

<mosaic_0001>
module attributes {stable_mosaic.version = 11 : i64} {
  func.func @_fused_mlp_kernel(%arg0: i32, %arg1: memref<8x1024xf32, #tpu.memory_space<vmem>>, %arg2: memref<1024x128xf32, #tpu.memory_space<vmem>>, %arg3: memref<1x128xf32, #tpu.memory_space<vmem>>, %arg4: memref<128x128xf32, #tpu.memory_space<vmem>>, %arg5: memref<1x128xf32, #tpu.memory_space<vmem>>, %arg6: memref<8x128xf32, #tpu.memory_space<vmem>>, %arg7: memref<8x128xf32, #tpu.memory_space<vmem>>, %arg8: memref<8x128xf32, #tpu.memory_space<vmem>>) attributes {dimension_semantics = [#tpu.dimension_semantics<parallel>], iteration_bounds = array<i64: 1>, scalar_prefetch = 0 : i64, scratch_operands = 0 : i64, tpu.core_type = #tpu.core_type<tc>, window_params = [{transform_indices = @transform_0, window_bounds = array<i64: 8, 1024>}, {pipeline_mode = #tpu.pipeline_mode<synchronous>, transform_indices = @transform_1, window_bounds = array<i64: 1024, 128>}, {pipeline_mode = #tpu.pipeline_mode<synchronous>, transform_indices = @transform_2, window_bounds = array<i64: 1, 128>}, {pipeline_mode = #tpu.pipeline_mode<synchronous>, transform_indices = @transform_3, window_bounds = array<i64: 128, 128>}, {pipeline_mode = #tpu.pipeline_mode<synchronous>, transform_indices = @transform_4, window_bounds = array<i64: 1, 128>}, {transform_indices = @transform_5, window_bounds = array<i64: 8, 128>}, {transform_indices = @transform_6, window_bounds = array<i64: 8, 128>}, {transform_indices = @transform_7, window_bounds = array<i64: 8, 128>}]} {
    %c0 = arith.constant 0 : index
    %c0_0 = arith.constant 0 : index
    %0 = vector.load %arg1[%c0, %c0_0] : memref<8x1024xf32, #tpu.memory_space<vmem>>, vector<8x1024xf32>
    %c0_1 = arith.constant 0 : index
    %c0_2 = arith.constant 0 : index
    %1 = vector.load %arg2[%c0_1, %c0_2] : memref<1024x128xf32, #tpu.memory_space<vmem>>, vector<1024x128xf32>
    %cst = arith.constant dense<0.000000e+00> : vector<8x128xf32>
    %2 = tpu.matmul %0, %1, %cst {dimension_numbers = #tpu.dot_dimension_numbers<[1], [0], [0], [1], [0, 0, 1, 1], [], []>} : vector<8x1024xf32>, vector<1024x128xf32>, vector<8x128xf32> -> vector<8x128xf32>
    %c0_3 = arith.constant 0 : index
    %c0_4 = arith.constant 0 : index
    %3 = vector.load %arg3[%c0_3, %c0_4] : memref<1x128xf32, #tpu.memory_space<vmem>>, vector<1x128xf32>
    %4 = vector.broadcast %3 : vector<1x128xf32> to vector<8x128xf32>
    %5 = arith.addf %2, %4 : vector<8x128xf32>
    %cst_5 = arith.constant 0.000000e+00 : f32
    %6 = vector.broadcast %cst_5 : f32 to vector<8x128xf32>
    %7 = arith.maximumf %5, %6 : vector<8x128xf32>
    %c0_6 = arith.constant 0 : index
    %c0_7 = arith.constant 0 : index
    %8 = vector.load %arg6[%c0_6, %c0_7] : memref<8x128xf32, #tpu.memory_space<vmem>>, vector<8x128xf32>
    tpu.vector_store %arg6[%c0_6, %c0_7], %5 {strides = array<i32>} : memref<8x128xf32, #tpu.memory_space<vmem>>, vector<8x128xf32>,
    %c0_8 = arith.constant 0 : index
    %c0_9 = arith.constant 0 : index
    %9 = vector.load %arg7[%c0_8, %c0_9] : memref<8x128xf32, #tpu.memory_space<vmem>>, vector<8x128xf32>
    tpu.vector_store %arg7[%c0_8, %c0_9], %7 {strides = array<i32>} : memref<8x128xf32, #tpu.memory_space<vmem>>, vector<8x128xf32>,
    %c0_10 = arith.constant 0 : index
    %c0_11 = arith.constant 0 : index
    %10 = vector.load %arg4[%c0_10, %c0_11] : memref<128x128xf32, #tpu.memory_space<vmem>>, vector<128x128xf32>
    %cst_12 = arith.constant dense<0.000000e+00> : vector<8x128xf32>
    %11 = tpu.matmul %7, %10, %cst_12 {dimension_numbers = #tpu.dot_dimension_numbers<[1], [0], [0], [1], [0, 0, 1, 1], [], []>} : vector<8x128xf32>, vector<128x128xf32>, vector<8x128xf32> -> vector<8x128xf32>
    %c0_13 = arith.constant 0 : index
    %c0_14 = arith.constant 0 : index
    %12 = vector.load %arg5[%c0_13, %c0_14] : memref<1x128xf32, #tpu.memory_space<vmem>>, vector<1x128xf32>
    %13 = vector.broadcast %12 : vector<1x128xf32> to vector<8x128xf32>
    %14 = arith.addf %11, %13 : vector<8x128xf32>
    %c0_15 = arith.constant 0 : index
    %c0_16 = arith.constant 0 : index
    %15 = vector.load %arg8[%c0_15, %c0_16] : memref<8x128xf32, #tpu.memory_space<vmem>>, vector<8x128xf32>
    tpu.vector_store %arg8[%c0_15, %c0_16], %14 {strides = array<i32>} : memref<8x128xf32, #tpu.memory_space<vmem>>, vector<8x128xf32>,
    return
  }
  func.func @transform_0(%arg0: i32) -> (i32, i32) {
    %c0_i32 = arith.constant 0 : i32
    %c0_i32_0 = arith.constant 0 : i32
    return %arg0, %c0_i32 : i32, i32
  }
  func.func @transform_1(%arg0: i32) -> (i32, i32) {
    %c0_i32 = arith.constant 0 : i32
    %c0_i32_0 = arith.constant 0 : i32
    %c0_i32_1 = arith.constant 0 : i32
    return %c0_i32, %c0_i32_0 : i32, i32
  }
  func.func @transform_2(%arg0: i32) -> (i32, i32) {
    %c0_i32 = arith.constant 0 : i32
    %c0_i32_0 = arith.constant 0 : i32
    %c0_i32_1 = arith.constant 0 : i32
    return %c0_i32, %c0_i32_0 : i32, i32
  }
  func.func @transform_3(%arg0: i32) -> (i32, i32) {
    %c0_i32 = arith.constant 0 : i32
    %c0_i32_0 = arith.constant 0 : i32
    %c0_i32_1 = arith.constant 0 : i32
    return %c0_i32, %c0_i32_0 : i32, i32
  }
  func.func @transform_4(%arg0: i32) -> (i32, i32) {
    %c0_i32 = arith.constant 0 : i32
    %c0_i32_0 = arith.constant 0 : i32
    %c0_i32_1 = arith.constant 0 : i32
    return %c0_i32, %c0_i32_0 : i32, i32
  }
  func.func @transform_5(%arg0: i32) -> (i32, i32) {
    %c0_i32 = arith.constant 0 : i32
    %c0_i32_0 = arith.constant 0 : i32
    return %arg0, %c0_i32 : i32, i32
  }
  func.func @transform_6(%arg0: i32) -> (i32, i32) {
    %c0_i32 = arith.constant 0 : i32
    %c0_i32_0 = arith.constant 0 : i32
    return %arg0, %c0_i32 : i32, i32
  }
  func.func @transform_7(%arg0: i32) -> (i32, i32) {
    %c0_i32 = arith.constant 0 : i32
    %c0_i32_0 = arith.constant 0 : i32
    return %arg0, %c0_i32 : i32, i32
  }
}

</mosaic_0001>

<bundles_post_ra>
// kernel: tpu_custom_call.1
= control target key start
LH: loop header
LB: loop body
LE: loop exit
PB: predicated region body
PF: predicated region fallthrough
CT: control target
= control target key end

     0   :  { %13 = vsyncpa [#allocation3], 0  ;;  %s1259_s0 = inlined_call_operand.hbm [shape: f32[8,1024], index: 0, kind: input, shape index: {}]   ;;  %s1260_s1 = inlined_call_operand.hbm [shape: f32[1024,128], index: 1, kind: input, shape index: {}]   ;;  %s1261_s2 = inlined_call_operand.vmem [shape: f32[1,128], index: 2, kind: input, shape index: {}]   ;;  %s1262_s3 = inlined_call_operand.hbm [shape: f32[128,128], index: 3, kind: input, shape index: {}]   ;;  %s1263_s4 = inlined_call_operand.vmem [shape: f32[1,128], index: 4, kind: input, shape index: {}]   ;;  %s1264_s5 = inlined_call_operand.hbm [shape: f32[8,128], index: 5, kind: output, shape index: {0}]   ;;  %s1265_s6 = inlined_call_operand.hbm [shape: f32[8,128], index: 6, kind: output, shape index: {1}]   ;;  %s1266_s7 = inlined_call_operand.hbm [shape: f32[8,128], index: 7, kind: output, shape index: {2}]  }
   0x1   :  { %14 = vsyncpa [#allocation6], 0 }
   0x2   :  { %15 = vsyncpa [#allocation4], 0 }
   0x3   :  { %16 = vsyncpa [#allocation10], 0  ;;  %s1124_s24 = smov [#allocation5]   ;;  %s984_s28 = scalar_lea.hbm %s1260_s1, 16384 }
   0x4   :  { %s32_s25 = sshll.u32 %s1124_s24, 4  ;;  %p985_p0 = scmp.ne.s32.totalorder %s1260_s1, %s984_s28  ;;  %s33_s25 = int_to_ptr.vmem [resolvable:$true] %s32_s25 }
   0x5   :  { %p988_p1 = scmp.lt.u32.totalorder %s984_s28, %s1260_s1 }
   0x7   :  { %p990_p2 = pnand %p988_p1, %p985_p0 }
   0x9   :  { %993 = shalt.err (!%p990_p2)
}
   0xa   :  { %s994_s10 = scalar_lea.vmem %s33_s25, 16384  ;;  %p999_p4 = scmp.lt.s32.totalorder %s33_s25, %s33_s25 }
   0xb   :  { %p995_p3 = scmp.ne.s32.totalorder %s33_s25, %s994_s10  ;;  %p1000_p5 = scmp.lt.s32.totalorder %s994_s10, %s994_s10 }
   0xd   :  { %p1001_p6 = por %p1000_p5, %p999_p4 }
   0xf   :  { %p1002_p7 = pnand %p1001_p6, %p995_p3 }
  0x11   :  { %1005 = shalt.err (!%p1002_p7)
}
  0x12   :  { %s1125_s11 = smov 128   ;;  %s1126_s12 = smov 8  }
  0x13   :  { %38 = dma.hbm_to_vmem [thread:$0]  %s1260_s1, 16384, %s33_s25, [#allocation6], %s1125_s11, %s1125_s11, %s1126_s12  }
  0x14   :  { %s1127_s15 = smov [#allocation2]   ;;  %s1128_s17 = smov [#allocation7]  }
  0x15   :  { %s23_s16 = sshll.u32 %s1127_s15, 4  ;;  %s46_s18 = sshll.u32 %s1128_s17, 4  ;;  %s24_s16 = int_to_ptr.vmem [resolvable:$true] %s23_s16  ;;  %s47_s18 = int_to_ptr.vmem [resolvable:$true] %s46_s18 }
  0x16   :  { %s1006_s21 = scalar_lea.hbm %s1259_s0, 1024 }
  0x17   :  { %p1007_p8 = scmp.ne.s32.totalorder %s1259_s0, %s1006_s21  ;;  %p1010_p9 = scmp.lt.u32.totalorder %s1006_s21, %s1259_s0 }
  0x19   :  { %p1012_p10 = pnand %p1010_p9, %p1007_p8 }
  0x1b   :  { %1015 = shalt.err (!%p1012_p10)
}
  0x1c   :  { %s1016_s1 = scalar_lea.vmem %s24_s16, 1024  ;;  %p1021_p12 = scmp.lt.s32.totalorder %s24_s16, %s24_s16 }
  0x1d   :  { %p1017_p11 = scmp.ne.s32.totalorder %s24_s16, %s1016_s1  ;;  %p1022_p13 = scmp.lt.s32.totalorder %s1016_s1, %s1016_s1 }
  0x1f   :  { %p1023_p0 = por %p1022_p13, %p1021_p12 }
  0x21   :  { %p1024_p1 = pnand %p1023_p0, %p1017_p11 }
  0x23   :  { %1027 = shalt.err (!%p1024_p1)
}
  0x24   :  { %26 = dma.hbm_to_vmem [thread:$0]  %s1259_s0, 1024, %s24_s16, [#allocation3]  }
  0x25   :  { %s1028_s30 = scalar_lea.hbm %s1262_s3, 2048 }
  0x26   :  { %p1029_p2 = scmp.ne.s32.totalorder %s1262_s3, %s1028_s30  ;;  %p1032_p3 = scmp.lt.u32.totalorder %s1028_s30, %s1262_s3 }
  0x28   :  { %p1034_p4 = pnand %p1032_p3, %p1029_p2 }
  0x2a   :  { %1037 = shalt.err (!%p1034_p4)
}
  0x2b   :  { %s1038_s14 = scalar_lea.vmem %s47_s18, 2048  ;;  %p1043_p6 = scmp.lt.s32.totalorder %s47_s18, %s47_s18 }
  0x2c   :  { %p1039_p5 = scmp.ne.s32.totalorder %s47_s18, %s1038_s14  ;;  %p1044_p7 = scmp.lt.s32.totalorder %s1038_s14, %s1038_s14 }
  0x2e   :  { %p1045_p8 = por %p1044_p7, %p1043_p6 }
  0x30   :  { %p1046_p9 = pnand %p1045_p8, %p1039_p5 }
  0x32   :  { %1049 = shalt.err (!%p1046_p9)
}
  0x33   :  { %52 = dma.hbm_to_vmem [thread:$0]  %s1262_s3, 2048, %s47_s18, [#allocation6], %s1125_s11, %s1125_s11, %s1126_s12  }
  0x34   :  { %1116 = dma.done.wait [#allocation3], 1024  }
  0x35   :  { %1117 = vsyncadd [#allocation3], 4294966272 }
  0x36   :  { %1118 = dma.done.wait [#allocation6], 18432  }
  0x37   :  { %1119 = vsyncadd [#allocation6], 4294948864  ;;  %v88_v0 = vld [vmem:[#allocation5 + $0x80] sm:$0xff]  ;;  %v89_v1 = vld [vmem:[#allocation5 + $0x88] sm:$0xff]  ;;  %vm1130_vm0 = vmmov 0   ;;  %s1133_s16 = smov [#allocation8]  }
  0x38   :  { %v72_v2 = vld [vmem:[#allocation5] sm:$0xff]  ;;  %v821_v3 = vpack.c.bf16 %v89_v1, %v88_v0  ;;  %v73_v4 = vld [vmem:[#allocation5 + $0x8] sm:$0xff]  ;;  %v90_v11 = vld [vmem:[#allocation5 + $0x90] sm:$0xff]  ;;  %s590_s17 = sshll.u32 %s1133_s16, 4  ;;  %s591_s17 = int_to_ptr.vmem [resolvable:$true] %s590_s17 }
  0x39   :  { %v120_v5 = vld [vmem:[#allocation5 + $0x180] sm:$0xff]  ;;  %v121_v6 = vld [vmem:[#allocation5 + $0x188] sm:$0xff]  ;;  %v823_v7 = vpack.c.bf16 %v73_v4, %v72_v2  ;;  %v91_v13 = vld [vmem:[#allocation5 + $0x98] sm:$0xff] }
  0x3a   :  { %v853_v8 = vpack.c.bf16 %v121_v6, %v120_v5  ;;  %v104_v9 = vld [vmem:[#allocation5 + $0x100] sm:$0xff]  ;;  %v105_v10 = vld [vmem:[#allocation5 + $0x108] sm:$0xff]  ;;  %822 = vmatprep.subr.bf16.mxu0 %v821_v3  ;;  %v74_v14 = vld [vmem:[#allocation5 + $0x10] sm:$0xff]  ;;  %v825_v16 = vpack.c.bf16 %v91_v13, %v90_v11 }
  0x3b   :  { %v855_v12 = vpack.c.bf16 %v105_v10, %v104_v9  ;;  %v75_v15 = vld [vmem:[#allocation5 + $0x18] sm:$0xff]  ;;  %824 = vmatpush3.bf16.msra.mxu0 %v823_v7  ;;  %v122_v18 = vld [vmem:[#allocation5 + $0x190] sm:$0xff]  ;;  %v92_v23 = vld [vmem:[#allocation5 + $0xa0] sm:$0xff] }
  0x3c   :  { %854 = vmatprep.subr.bf16.mxu1 %v853_v8  ;;  %v827_v17 = vpack.c.bf16 %v75_v15, %v74_v14  ;;  %v123_v19 = vld [vmem:[#allocation5 + $0x198] sm:$0xff]  ;;  %v106_v20 = vld [vmem:[#allocation5 + $0x110] sm:$0xff]  ;;  %v93_v24 = vld [vmem:[#allocation5 + $0xa8] sm:$0xff]  ;;  %826 = vmatprep.subr.bf16.mxu0 %v825_v16 }
  0x3d   :  { %856 = vmatpush3.bf16.msra.mxu1 %v855_v12  ;;  %v857_v21 = vpack.c.bf16 %v123_v19, %v122_v18  ;;  %v107_v22 = vld [vmem:[#allocation5 + $0x118] sm:$0xff]  ;;  %v829_v26 = vpack.c.bf16 %v93_v24, %v92_v23  ;;  %v76_v27 = vld [vmem:[#allocation5 + $0x20] sm:$0xff]  ;;  %v77_v28 = vld [vmem:[#allocation5 + $0x28] sm:$0xff] }
  0x3e   :  { %v859_v25 = vpack.c.bf16 %v107_v22, %v106_v20  ;;  %v124_v29 = vld [vmem:[#allocation5 + $0x1a0] sm:$0xff]  ;;  %v125_v30 = vld [vmem:[#allocation5 + $0x1a8] sm:$0xff]  ;;  %v831_v33 = vpack.c.bf16 %v77_v28, %v76_v27  ;;  %v94_v35 = vld [vmem:[#allocation5 + $0xb0] sm:$0xff] }
  0x3f   :  { %858 = vmatprep.subr.bf16.mxu1 %v857_v21  ;;  %v108_v31 = vld [vmem:[#allocation5 + $0x120] sm:$0xff]  ;;  %v109_v32 = vld [vmem:[#allocation5 + $0x128] sm:$0xff]  ;;  %828 = vmatpush3.bf16.msra.mxu0 %v827_v17  ;;  %v861_v34 = vpack.c.bf16 %v125_v30, %v124_v29  ;;  %v95_v36 = vld [vmem:[#allocation5 + $0xb8] sm:$0xff] }
  0x40   :  { %v78_v37 = vld [vmem:[#allocation5 + $0x30] sm:$0xff]  ;;  %830 = vmatprep.subr.bf16.mxu0 %v829_v26  ;;  %v863_v38 = vpack.c.bf16 %v109_v32, %v108_v31  ;;  %v833_v39 = vpack.c.bf16 %v95_v36, %v94_v35  ;;  %v79_v40 = vld [vmem:[#allocation5 + $0x38] sm:$0xff]  ;;  %v96_v46 = vld [vmem:[#allocation5 + $0xc0] sm:$0xff] }
  0x41   :  { %860 = vmatpush3.bf16.msra.mxu1 %v859_v25  ;;  %v126_v41 = vld [vmem:[#allocation5 + $0x1b0] sm:$0xff]  ;;  %v127_v42 = vld [vmem:[#allocation5 + $0x1b8] sm:$0xff]  ;;  %v97_v47 = vld [vmem:[#allocation5 + $0xc8] sm:$0xff]  ;;  %v835_v48 = vpack.c.bf16 %v79_v40, %v78_v37 }
  0x42   :  { %862 = vmatprep.subr.bf16.mxu1 %v861_v34  ;;  %v865_v43 = vpack.c.bf16 %v127_v42, %v126_v41  ;;  %v110_v44 = vld [vmem:[#allocation5 + $0x130] sm:$0xff]  ;;  %v111_v45 = vld [vmem:[#allocation5 + $0x138] sm:$0xff]  ;;  %v128_v49 = vld [vmem:[#allocation5 + $0x1c0] sm:$0xff]  ;;  %v837_v52 = vpack.c.bf16 %v97_v47, %v96_v46 }
  0x43   :  { %832 = vmatpush3.bf16.msra.mxu0 %v831_v33  ;;  %v129_v50 = vld [vmem:[#allocation5 + $0x1c8] sm:$0xff]  ;;  %v867_v51 = vpack.c.bf16 %v111_v45, %v110_v44  ;;  %v80_v53 = vld [vmem:[#allocation5 + $0x40] sm:$0xff]  ;;  %v98_v58 = vld [vmem:[#allocation5 + $0xd0] sm:$0xff] }
  0x44   :  { %834 = vmatprep.subr.bf16.mxu0 %v833_v39  ;;  %v81_v54 = vld [vmem:[#allocation5 + $0x48] sm:$0xff]  ;;  %v112_v55 = vld [vmem:[#allocation5 + $0x140] sm:$0xff]  ;;  %v869_v56 = vpack.c.bf16 %v129_v50, %v128_v49  ;;  %v99_v59 = vld [vmem:[#allocation5 + $0xd8] sm:$0xff] }
  0x45   :  { %864 = vmatpush3.bf16.msra.mxu1 %v863_v38  ;;  %v113_v57 = vld [vmem:[#allocation5 + $0x148] sm:$0xff]  ;;  %v130_v60 = vld [vmem:[#allocation5 + $0x1d0] sm:$0xff]  ;;  %v131_v61 = vld [vmem:[#allocation5 + $0x1d8] sm:$0xff]  ;;  %v839_v62 = vpack.c.bf16 %v81_v54, %v80_v53  ;;  %v841_v0 = vpack.c.bf16 %v99_v59, %v98_v58 }
  0x46   :  { %866 = vmatprep.subr.bf16.mxu1 %v865_v43  ;;  %v871_v63 = vpack.c.bf16 %v113_v57, %v112_v55  ;;  %v82_v1 = vld [vmem:[#allocation5 + $0x50] sm:$0xff]  ;;  %v83_v2 = vld [vmem:[#allocation5 + $0x58] sm:$0xff]  ;;  %v873_v4 = vpack.c.bf16 %v131_v61, %v130_v60  ;;  %v100_v6 = vld [vmem:[#allocation5 + $0xe0] sm:$0xff] }
  0x47   :  { %836 = vmatpush3.bf16.msra.mxu0 %v835_v48  ;;  %v114_v3 = vld [vmem:[#allocation5 + $0x150] sm:$0xff]  ;;  %v115_v5 = vld [vmem:[#allocation5 + $0x158] sm:$0xff]  ;;  %v101_v7 = vld [vmem:[#allocation5 + $0xe8] sm:$0xff]  ;;  %v843_v10 = vpack.c.bf16 %v83_v2, %v82_v1 }
  0x48   :  { %838 = vmatprep.subr.bf16.mxu0 %v837_v52  ;;  %v132_v8 = vld [vmem:[#allocation5 + $0x1e0] sm:$0xff]  ;;  %v133_v9 = vld [vmem:[#allocation5 + $0x1e8] sm:$0xff]  ;;  %v875_v13 = vpack.c.bf16 %v115_v5, %v114_v3  ;;  %v845_v14 = vpack.c.bf16 %v101_v7, %v100_v6  ;;  %v102_v19 = vld [vmem:[#allocation5 + $0xf0] sm:$0xff] }
  0x49   :  { %868 = vmatpush3.bf16.msra.mxu1 %v867_v51  ;;  %v84_v11 = vld [vmem:[#allocation5 + $0x60] sm:$0xff]  ;;  %v85_v12 = vld [vmem:[#allocation5 + $0x68] sm:$0xff]  ;;  %v877_v18 = vpack.c.bf16 %v133_v9, %v132_v8  ;;  %v103_v20 = vld [vmem:[#allocation5 + $0xf8] sm:$0xff] }
  0x4a   :  { %870 = vmatprep.subr.bf16.mxu1 %v869_v56  ;;  %v116_v15 = vld [vmem:[#allocation5 + $0x160] sm:$0xff]  ;;  %v117_v16 = vld [vmem:[#allocation5 + $0x168] sm:$0xff]  ;;  %v67_v21 = vld [vmem:[#allocation2 + $0x18] sm:$0xff]  ;;  %v847_v24 = vpack.c.bf16 %v85_v12, %v84_v11  ;;  %v849_v26 = vpack.c.bf16 %v103_v20, %v102_v19 }
  0x4b   :  { %840 = vmatpush3.bf16.msra.mxu0 %v839_v62  ;;  %v65_v17 = vld [vmem:[#allocation2 + $0x8] sm:$0xff]  ;;  %v134_v22 = vld [vmem:[#allocation5 + $0x1f0] sm:$0xff]  ;;  %v135_v23 = vld [vmem:[#allocation5 + $0x1f8] sm:$0xff]  ;;  %341 = vmatprep.mubr.f32.mxu1 %v67_v21  ;;  %v879_v25 = vpack.c.bf16 %v117_v16, %v116_v15 }
  0x4c   :  { %842 = vmatprep.subr.bf16.mxu0 %v841_v0  ;;  %271 = vmatprep.mubr.f32.mxu0 %v65_v17  ;;  %v86_v27 = vld [vmem:[#allocation5 + $0x70] sm:$0xff]  ;;  %v87_v28 = vld [vmem:[#allocation5 + $0x78] sm:$0xff]  ;;  %v881_v30 = vpack.c.bf16 %v135_v23, %v134_v22  ;;  %v152_v32 = vld [vmem:[#allocation5 + $0x280] sm:$0xff] }
  0x4d   :  { %872 = vmatpush3.bf16.msra.mxu1 %v871_v63  ;;  %v118_v29 = vld [vmem:[#allocation5 + $0x170] sm:$0xff]  ;;  %v119_v31 = vld [vmem:[#allocation5 + $0x178] sm:$0xff]  ;;  %v153_v33 = vld [vmem:[#allocation5 + $0x288] sm:$0xff]  ;;  %v851_v36 = vpack.c.bf16 %v87_v28, %v86_v27 }
  0x4e   :  { %874 = vmatprep.subr.bf16.mxu1 %v873_v4  ;;  %v184_v34 = vld [vmem:[#allocation5 + $0x380] sm:$0xff]  ;;  %v185_v35 = vld [vmem:[#allocation5 + $0x388] sm:$0xff]  ;;  %v883_v37 = vpack.c.bf16 %v119_v31, %v118_v29  ;;  %v885_v38 = vpack.c.bf16 %v153_v33, %v152_v32  ;;  %v154_v44 = vld [vmem:[#allocation5 + $0x290] sm:$0xff] }
  0x4f   :  { %844 = vmatpush3.bf16.msra.mxu0 %v843_v10  ;;  %v136_v39 = vld [vmem:[#allocation5 + $0x200] sm:$0xff]  ;;  %v137_v40 = vld [vmem:[#allocation5 + $0x208] sm:$0xff]  ;;  %v917_v42 = vpack.c.bf16 %v185_v35, %v184_v34  ;;  %v155_v45 = vld [vmem:[#allocation5 + $0x298] sm:$0xff] }
  0x50   :  { %846 = vmatprep.subr.bf16.mxu0 %v845_v14  ;;  %v168_v41 = vld [vmem:[#allocation5 + $0x300] sm:$0xff]  ;;  %v169_v43 = vld [vmem:[#allocation5 + $0x308] sm:$0xff]  ;;  %v186_v46 = vld [vmem:[#allocation5 + $0x390] sm:$0xff]  ;;  %v887_v49 = vpack.c.bf16 %v137_v40, %v136_v39  ;;  %v889_v52 = vpack.c.bf16 %v155_v45, %v154_v44 }
  0x51   :  { %876 = vmatpush3.bf16.msra.mxu1 %v875_v13  ;;  %v187_v47 = vld [vmem:[#allocation5 + $0x398] sm:$0xff]  ;;  %v64_v48 = vld [vmem:[#allocation2] sm:$0xff]  ;;  %v66_v50 = vld [vmem:[#allocation2 + $0x10] sm:$0xff]  ;;  %v919_v51 = vpack.c.bf16 %v169_v43, %v168_v41 }
  0x52   :  { %878 = vmatprep.subr.bf16.mxu1 %v877_v18  ;;  %v138_v53 = vld [vmem:[#allocation5 + $0x210] sm:$0xff]  ;;  %v139_v54 = vld [vmem:[#allocation5 + $0x218] sm:$0xff]  ;;  %v921_v56 = vpack.c.bf16 %v187_v47, %v186_v46  ;;  %v156_v58 = vld [vmem:[#allocation5 + $0x2a0] sm:$0xff] }
  0x53   :  { %848 = vmatpush3.bf16.msra.mxu0 %v847_v24  ;;  %v170_v55 = vld [vmem:[#allocation5 + $0x310] sm:$0xff]  ;;  %v171_v57 = vld [vmem:[#allocation5 + $0x318] sm:$0xff]  ;;  %v157_v59 = vld [vmem:[#allocation5 + $0x2a8] sm:$0xff]  ;;  %v891_v62 = vpack.c.bf16 %v139_v54, %v138_v53 }
  0x54   :  { %850 = vmatprep.subr.bf16.mxu0 %v849_v26  ;;  %v188_v60 = vld [vmem:[#allocation5 + $0x3a0] sm:$0xff]  ;;  %v189_v61 = vld [vmem:[#allocation5 + $0x3a8] sm:$0xff]  ;;  %v923_v63 = vpack.c.bf16 %v171_v57, %v170_v55  ;;  %v893_v0 = vpack.c.bf16 %v157_v59, %v156_v58  ;;  %v158_v6 = vld [vmem:[#allocation5 + $0x2b0] sm:$0xff] }
  0x55   :  { %880 = vmatpush3.bf16.msra.mxu1 %v879_v25  ;;  %v140_v1 = vld [vmem:[#allocation5 + $0x220] sm:$0xff]  ;;  %v141_v2 = vld [vmem:[#allocation5 + $0x228] sm:$0xff]  ;;  %v925_v4 = vpack.c.bf16 %v189_v61, %v188_v60  ;;  %v159_v7 = vld [vmem:[#allocation5 + $0x2b8] sm:$0xff] }
  0x56   :  { %882 = vmatprep.subr.bf16.mxu1 %v881_v30  ;;  %v172_v3 = vld [vmem:[#allocation5 + $0x320] sm:$0xff]  ;;  %v173_v5 = vld [vmem:[#allocation5 + $0x328] sm:$0xff]  ;;  %v190_v8 = vld [vmem:[#allocation5 + $0x3b0] sm:$0xff]  ;;  %v895_v10 = vpack.c.bf16 %v141_v2, %v140_v1  ;;  %v897_v12 = vpack.c.bf16 %v159_v7, %v158_v6 }
  0x57   :  { %852 = vmatpush3.bf16.msra.mxu0 %v851_v36  ;;  %v191_v9 = vld [vmem:[#allocation5 + $0x3b8] sm:$0xff]  ;;  %v927_v11 = vpack.c.bf16 %v173_v5, %v172_v3  ;;  %v142_v13 = vld [vmem:[#allocation5 + $0x230] sm:$0xff]  ;;  %v160_v18 = vld [vmem:[#allocation5 + $0x2c0] sm:$0xff] }
  0x58   :  { %886 = vmatprep.subr.bf16.mxu0 %v885_v38  ;;  %v143_v14 = vld [vmem:[#allocation5 + $0x238] sm:$0xff]  ;;  %v174_v15 = vld [vmem:[#allocation5 + $0x330] sm:$0xff]  ;;  %v929_v16 = vpack.c.bf16 %v191_v9, %v190_v8  ;;  %v161_v19 = vld [vmem:[#allocation5 + $0x2c8] sm:$0xff] }
  0x59   :  { %884 = vmatpush3.bf16.msra.mxu1 %v883_v37  ;;  %v175_v17 = vld [vmem:[#allocation5 + $0x338] sm:$0xff]  ;;  %v192_v20 = vld [vmem:[#allocation5 + $0x3c0] sm:$0xff]  ;;  %v193_v21 = vld [vmem:[#allocation5 + $0x3c8] sm:$0xff]  ;;  %v899_v22 = vpack.c.bf16 %v143_v14, %v142_v13  ;;  %v901_v26 = vpack.c.bf16 %v161_v19, %v160_v18 }
  0x5a   :  { %918 = vmatprep.subr.bf16.mxu1 %v917_v42  ;;  %272 = vmatmul.mubr.f32.vlgmr.msra.gmra.mrb[0].mxu0 %v64_v48  ;;  %v69_v23 = vld [vmem:[#allocation2 + $0x28] sm:$0xff]  ;;  %v71_v24 = vld [vmem:[#allocation2 + $0x38] sm:$0xff]  ;;  %v931_v25 = vpack.c.bf16 %v175_v17, %v174_v15  ;;  %v144_v27 = vld [vmem:[#allocation5 + $0x240] sm:$0xff]  ;;  %v933_v30 = vpack.c.bf16 %v193_v21, %v192_v20 }
  0x5b   :  { %888 = vmatpush3.bf16.msra.mxu0 %v887_v49  ;;  %v145_v28 = vld [vmem:[#allocation5 + $0x248] sm:$0xff]  ;;  %v176_v29 = vld [vmem:[#allocation5 + $0x340] sm:$0xff]  ;;  %v162_v32 = vld [vmem:[#allocation5 + $0x2d0] sm:$0xff]  ;;  %411 = vmatprep.mubr.f32.mxu0 %v69_v23 }
  0x5c   :  { %342 = vmatmul.mubr.f32.vlgmr.msra.gmra.mrb[0].mxu1 %v66_v50  ;;  %890 = vmatprep.subr.bf16.mxu0 %v889_v52  ;;  %v177_v31 = vld [vmem:[#allocation5 + $0x348] sm:$0xff]  ;;  %v163_v33 = vld [vmem:[#allocation5 + $0x2d8] sm:$0xff]  ;;  %v194_v34 = vld [vmem:[#allocation5 + $0x3d0] sm:$0xff]  ;;  %v903_v36 = vpack.c.bf16 %v145_v28, %v144_v27 }
  0x5d   :  { %920 = vmatpush3.bf16.msra.mxu1 %v919_v51  ;;  %v195_v35 = vld [vmem:[#allocation5 + $0x3d8] sm:$0xff]  ;;  %481 = vmatprep.mubr.f32.mxu1 %v71_v24  ;;  %v935_v37 = vpack.c.bf16 %v177_v31, %v176_v29  ;;  %v905_v38 = vpack.c.bf16 %v163_v33, %v162_v32  ;;  %v146_v39 = vld [vmem:[#allocation5 + $0x250] sm:$0xff]  ;;  %v164_v44 = vld [vmem:[#allocation5 + $0x2e0] sm:$0xff]  ;;  %v1131_v33 = vmov 0.0  }
  0x5e   :  { %922 = vmatprep.subr.bf16.mxu1 %v921_v56  ;;  %v147_v40 = vld [vmem:[#allocation5 + $0x258] sm:$0xff]  ;;  %v178_v41 = vld [vmem:[#allocation5 + $0x350] sm:$0xff]  ;;  %v937_v42 = vpack.c.bf16 %v195_v35, %v194_v34  ;;  %v165_v45 = vld [vmem:[#allocation5 + $0x2e8] sm:$0xff] }
  0x5f   :  { %892 = vmatpush3.bf16.msra.mxu0 %v891_v62  ;;  %v179_v43 = vld [vmem:[#allocation5 + $0x358] sm:$0xff]  ;;  %v196_v46 = vld [vmem:[#allocation5 + $0x3e0] sm:$0xff]  ;;  %v197_v47 = vld [vmem:[#allocation5 + $0x3e8] sm:$0xff]  ;;  %v907_v48 = vpack.c.bf16 %v147_v40, %v146_v39  ;;  %v909_v50 = vpack.c.bf16 %v165_v45, %v164_v44 }
  0x60   :  { %894 = vmatprep.subr.bf16.mxu0 %v893_v0  ;;  %v939_v49 = vpack.c.bf16 %v179_v43, %v178_v41  ;;  %v148_v51 = vld [vmem:[#allocation5 + $0x260] sm:$0xff]  ;;  %v149_v52 = vld [vmem:[#allocation5 + $0x268] sm:$0xff]  ;;  %v941_v54 = vpack.c.bf16 %v197_v47, %v196_v46  ;;  %v166_v56 = vld [vmem:[#allocation5 + $0x2f0] sm:$0xff] }
  0x61   :  { %924 = vmatpush3.bf16.msra.mxu1 %v923_v63  ;;  %v180_v53 = vld [vmem:[#allocation5 + $0x360] sm:$0xff]  ;;  %v181_v55 = vld [vmem:[#allocation5 + $0x368] sm:$0xff]  ;;  %v167_v57 = vld [vmem:[#allocation5 + $0x2f8] sm:$0xff]  ;;  %v911_v60 = vpack.c.bf16 %v149_v52, %v148_v51 }
  0x62   :  { %926 = vmatprep.subr.bf16.mxu1 %v925_v4  ;;  %v198_v58 = vld [vmem:[#allocation5 + $0x3f0] sm:$0xff]  ;;  %v199_v59 = vld [vmem:[#allocation5 + $0x3f8] sm:$0xff]  ;;  %v943_v61 = vpack.c.bf16 %v181_v55, %v180_v53  ;;  %v913_v62 = vpack.c.bf16 %v167_v57, %v166_v56  ;;  %v68_v6 = vld [vmem:[#allocation2 + $0x20] sm:$0xff] }
  0x63   :  { %896 = vmatpush3.bf16.msra.mxu0 %v895_v10  ;;  %v150_v63 = vld [vmem:[#allocation5 + $0x270] sm:$0xff]  ;;  %v151_v0 = vld [vmem:[#allocation5 + $0x278] sm:$0xff]  ;;  %v945_v1 = vpack.c.bf16 %v199_v59, %v198_v58  ;;  %v490_v8 = vld [vmem:[#allocation7] sm:$0xff] }
  0x64   :  { %898 = vmatprep.subr.bf16.mxu0 %v897_v12  ;;  %v182_v2 = vld [vmem:[#allocation5 + $0x370] sm:$0xff]  ;;  %v183_v3 = vld [vmem:[#allocation5 + $0x378] sm:$0xff]  ;;  %v915_v4 = vpack.c.bf16 %v151_v0, %v150_v63  ;;  %v491_v9 = vld [vmem:[#allocation7 + $0x8] sm:$0xff] }
  0x65   :  { %928 = vmatpush3.bf16.msra.mxu1 %v927_v11  ;;  %v947_v5 = vpack.c.bf16 %v183_v3, %v182_v2  ;;  %v70_v7 = vld [vmem:[#allocation2 + $0x30] sm:$0xff]  ;;  %v1129_v11 = vmov 0.0|0.0   ;;  %v950_v12 = vpack.c.bf16 %v491_v9, %v490_v8  ;;  %v493_v13 = vld [vmem:[#allocation7 + $0x18] sm:$0xff]  ;;  %v494_v15 = vld [vmem:[#allocation7 + $0x20] sm:$0xff] }
  0x66   :  { %930 = vmatprep.subr.bf16.mxu1 %v929_v16  ;;  %v492_v10 = vld [vmem:[#allocation7 + $0x10] sm:$0xff]  ;;  %v495_v16 = vld [vmem:[#allocation7 + $0x28] sm:$0xff]  ;;  %v497_v19 = vld [vmem:[#allocation7 + $0x38] sm:$0xff] }
  0x67   :  { %900 = vmatpush3.bf16.msra.mxu0 %v899_v22  ;;  %v953_v14 = vpack.c.bf16 %v493_v13, %v492_v10  ;;  %v956_v17 = vpack.c.bf16 %v495_v16, %v494_v15  ;;  %v496_v18 = vld [vmem:[#allocation7 + $0x30] sm:$0xff]  ;;  %v498_v21 = vld [vmem:[#allocation7 + $0x40] sm:$0xff]  ;;  %v499_v22 = vld [vmem:[#allocation7 + $0x48] sm:$0xff] }
  0x68   :  { %902 = vmatprep.subr.bf16.mxu0 %v901_v26  ;;  %v959_v20 = vpack.c.bf16 %v497_v19, %v496_v18  ;;  %v962_v23 = vpack.c.bf16 %v499_v22, %v498_v21  ;;  %v500_v24 = vld [vmem:[#allocation7 + $0x50] sm:$0xff]  ;;  %v502_v27 = vld [vmem:[#allocation7 + $0x60] sm:$0xff]  ;;  %v503_v28 = vld [vmem:[#allocation7 + $0x68] sm:$0xff] }
  0x69   :  { %932 = vmatpush3.bf16.msra.mxu1 %v931_v25  ;;  %v501_v25 = vld [vmem:[#allocation7 + $0x58] sm:$0xff]  ;;  %v968_v29 = vpack.c.bf16 %v503_v28, %v502_v27  ;;  %v627_v35 = vld [vmem:[%s1261_s2] ss:$0 sm:$0xff]  ;;  %s1132_s2 = smov [#allocation9]  }
  0x6a   :  { %934 = vmatprep.subr.bf16.mxu1 %v933_v30  ;;  %v965_v26 = vpack.c.bf16 %v501_v25, %v500_v24  ;;  %v504_v30 = vld [vmem:[#allocation7 + $0x70] sm:$0xff]  ;;  %v505_v31 = vld [vmem:[#allocation7 + $0x78] sm:$0xff]  ;;  %s600_s12 = sshll.u32 %s1132_s2, 4  ;;  %s601_s12 = int_to_ptr.vmem [resolvable:$true] %s600_s12 }
  0x6b   :  { %904 = vmatpush3.bf16.msra.mxu0 %v903_v36  ;;  %v971_v32 = vpack.c.bf16 %v505_v31, %v504_v30  ;;  %s1050_s18 = scalar_lea.vmem %s601_s12, 128  ;;  %p1055_p11 = scmp.lt.s32.totalorder %s601_s12, %s601_s12 }
  0x6c   :  { %906 = vmatprep.subr.bf16.mxu0 %v905_v38  ;;  %p1051_p10 = scmp.ne.s32.totalorder %s601_s12, %s1050_s18  ;;  %p1056_p12 = scmp.lt.s32.totalorder %s1050_s18, %s1050_s18 }
  0x6d   :  { %936 = vmatpush3.bf16.msra.mxu1 %v935_v37 }
  0x6e   :  { %938 = vmatprep.subr.bf16.mxu1 %v937_v42  ;;  %p1057_p13 = por %p1056_p12, %p1055_p11 }
  0x6f   :  { %908 = vmatpush3.bf16.msra.mxu0 %v907_v48 }
  0x70   :  { %910 = vmatprep.subr.bf16.mxu0 %v909_v50  ;;  %p1058_p0 = pnand %p1057_p13, %p1051_p10 }
  0x71   :  { %940 = vmatpush3.bf16.msra.mxu1 %v939_v49 }
  0x72   :  { %942 = vmatprep.subr.bf16.mxu1 %v941_v54 }
  0x73   :  { %912 = vmatpush3.bf16.msra.mxu0 %v911_v60 }
  0x74   :  { %914 = vmatprep.subr.bf16.mxu0 %v913_v62 }
  0x75   :  { %944 = vmatpush3.bf16.msra.mxu1 %v943_v61 }
  0x76   :  { %946 = vmatprep.subr.bf16.mxu1 %v945_v1 }
  0x77   :  { %916 = vmatpush3.bf16.msra.mxu0 %v915_v4 }
  0x78   :  { %949 = vmatprep.subr.bf16.mxu0 %v1129_v11 }
  0x79   :  { %948 = vmatpush3.bf16.msra.mxu1 %v947_v5 }
  0x7a   :  { %412 = vmatmul.mubr.f32.vlgmr.msra.gmra.mrb[2].mxu0 %v68_v6 }
  0x7b   :  { %951 = vmatpush3.bf16.msra.mxu0 %v950_v12  ;;  %818 = vmatprep.mubr.msk.f32.mxu0 %vm1130_vm0, %v1131_v33 }
  0x7c   :  { %482 = vmatmul.mubr.f32.vlgmr.msra.gmra.mrb[2].mxu1 %v70_v7  ;;  %952 = vmatprep.subr.bf16.mxu0 %v1129_v11 }
  0x7f   :  { %954 = vmatpush3.bf16.msra.mxu0 %v953_v14 }
  0x80   :  { %955 = vmatprep.subr.bf16.mxu0 %v1129_v11 }
  0x83   :  { %957 = vmatpush3.bf16.msra.mxu0 %v956_v17 }
  0x84   :  { %958 = vmatprep.subr.bf16.mxu0 %v1129_v11 }
  0x87   :  { %960 = vmatpush3.bf16.msra.mxu0 %v959_v20 }
  0x88   :  { %961 = vmatprep.subr.bf16.mxu0 %v1129_v11 }
  0x8b   :  { %963 = vmatpush3.bf16.msra.mxu0 %v962_v23 }
  0x8c   :  { %964 = vmatprep.subr.bf16.mxu0 %v1129_v11 }
  0x8f   :  { %966 = vmatpush3.bf16.msra.mxu0 %v965_v26 }
  0x90   :  { %967 = vmatprep.subr.bf16.mxu0 %v1129_v11 }
  0x93   :  { %969 = vmatpush3.bf16.msra.mxu0 %v968_v29 }
  0x94   :  { %970 = vmatprep.subr.bf16.mxu0 %v1129_v11 }
  0x97   :  { %972 = vmatpush3.bf16.msra.mxu0 %v971_v32 }
 0x12d   :  { %v661_v34 = vpop.f32.mrb[0].mxu0 }
 0x12e   :  { %v662_v36 = vpop.f32.mrb[1].mxu0 }
 0x12f   :  { %v696_v37 = vpop.f32.mrb[0].mxu1  ;;  %v663_v38 = vadd.f32 %v662_v36, %v661_v34 }
 0x130   :  { %v697_v39 = vpop.f32.mrb[1].mxu1 }
 0x131   :  { %v698_v40 = vadd.f32 %v697_v39, %v696_v37  ;;  %v274_v41 = vadd.f32 %v663_v38, %v627_v35 }
 0x133   :  { %v344_v42 = vadd.f32 %v698_v40, %v274_v41 }
 0x14d   :  { %v731_v43 = vpop.f32.mrb[2].mxu0 }
 0x14e   :  { %v732_v44 = vpop.f32.mrb[3].mxu0 }
 0x14f   :  { %v766_v45 = vpop.f32.mrb[2].mxu1  ;;  %v733_v46 = vadd.f32 %v732_v44, %v731_v43 }
 0x150   :  { %v767_v47 = vpop.f32.mrb[3].mxu1 }
 0x151   :  { %v768_v48 = vadd.f32 %v767_v47, %v766_v45  ;;  %v414_v49 = vadd.f32 %v733_v46, %v344_v42 }
 0x153   :  { %v484_v50 = vadd.f32 %v768_v48, %v414_v49 }
 0x155   :  { %v487_v51 = vmax.f32 %v484_v50, 0.0  ;;  %488 = vst [vmem:[#allocation8] sm:$0xff] %v484_v50 }
 0x157   :  { %489 = vst [vmem:[#allocation9] sm:$0xff] %v487_v51  ;;  %819 = vmatmul.mubr.f32.vlgmr.msra.gmra.mrb[4].mxu0 %v487_v51 }
 0x158   :  { %1061 = shalt.err (!%p1058_p0)
}
 0x159   :  { %s1062_s21 = scalar_lea.hbm %s1265_s6, 128 }
 0x15a   :  { %p1063_p1 = scmp.ne.s32.totalorder %s1265_s6, %s1062_s21  ;;  %p1066_p2 = scmp.lt.u32.totalorder %s1062_s21, %s1265_s6 }
 0x15c   :  { %p1068_p3 = pnand %p1066_p2, %p1063_p1 }
 0x15e   :  { %1071 = shalt.err (!%p1068_p3)
}
 0x15f   :  { %603 = dma.vmem_to_hbm [thread:$0]  %s601_s12, 128, %s1265_s6, [#allocation10]  }
 0x160   :  { %s1072_s27 = scalar_lea.vmem %s591_s17, 128  ;;  %p1077_p5 = scmp.lt.s32.totalorder %s591_s17, %s591_s17 }
 0x161   :  { %p1073_p4 = scmp.ne.s32.totalorder %s591_s17, %s1072_s27  ;;  %p1078_p6 = scmp.lt.s32.totalorder %s1072_s27, %s1072_s27 }
 0x163   :  { %p1079_p7 = por %p1078_p6, %p1077_p5 }
 0x165   :  { %p1080_p8 = pnand %p1079_p7, %p1073_p4 }
 0x167   :  { %1083 = shalt.err (!%p1080_p8)
}
 0x168   :  { %s1084_s30 = scalar_lea.hbm %s1264_s5, 128 }
 0x169   :  { %p1085_p9 = scmp.ne.s32.totalorder %s1264_s5, %s1084_s30  ;;  %p1088_p10 = scmp.lt.u32.totalorder %s1084_s30, %s1264_s5 }
 0x16b   :  { %p1090_p11 = pnand %p1088_p10, %p1085_p9 }
 0x16d   :  { %1093 = shalt.err (!%p1090_p11)
}
 0x16e   :  { %593 = dma.vmem_to_hbm [thread:$0]  %s591_s17, 128, %s1264_s5, [#allocation4]   ;;  %v628_v52 = vld [vmem:[%s1263_s4] ss:$0 sm:$0xff] }
 0x16f   :  { %s1134_s3 = smov [#allocation11]  }
 0x170   :  { %s610_s11 = sshll.u32 %s1134_s3, 4  ;;  %s611_s11 = int_to_ptr.vmem [resolvable:$true] %s610_s11 }
 0x171   :  { %s1094_s2 = scalar_lea.vmem %s611_s11, 128  ;;  %p1099_p13 = scmp.lt.s32.totalorder %s611_s11, %s611_s11 }
 0x172   :  { %p1095_p12 = scmp.ne.s32.totalorder %s611_s11, %s1094_s2  ;;  %p1100_p0 = scmp.lt.s32.totalorder %s1094_s2, %s1094_s2 }
 0x174   :  { %p1101_p1 = por %p1100_p0, %p1099_p13 }
 0x176   :  { %p1102_p2 = pnand %p1101_p1, %p1095_p12 }
 0x22a   :  { %v579_v53 = vpop.f32.mrb[4].mxu0 }
 0x22b   :  { %v580_v54 = vadd.f32 %v628_v52, %v579_v53  ;;  %v820_v55 = vpop.f32.mrb[5].mxu0 }
 0x22d   :  { %583 = vst [vmem:[#allocation11] sm:$0xff] %v580_v54 }
 0x22e   :  { %1105 = shalt.err (!%p1102_p2)
}
 0x22f   :  { %s1106_s16 = scalar_lea.hbm %s1266_s7, 128 }
 0x230   :  { %p1107_p3 = scmp.ne.s32.totalorder %s1266_s7, %s1106_s16  ;;  %p1110_p4 = scmp.lt.u32.totalorder %s1106_s16, %s1266_s7 }
 0x232   :  { %p1112_p5 = pnand %p1110_p4, %p1107_p3 }
 0x234   :  { %1115 = shalt.err (!%p1112_p5)
}
 0x235   :  { %613 = dma.vmem_to_hbm [thread:$0]  %s611_s11, 128, %s1266_s7, [#allocation10]  }
 0x236   :  { %1120 = dma.done.wait [#allocation4], 128  }
 0x237   :  { %1121 = vsyncadd [#allocation4], 4294967168 }
 0x238   :  { %1122 = dma.done.wait [#allocation10], 256  }
 0x239   :  { %1123 = vsyncadd [#allocation10], 4294967040 }
 0x23a   :  { %623 = vsyncpa [#allocation3], 1 }
 0x23b   :  { %624 = vsyncpa [#allocation6], 1 }
 0x23c   :  { %625 = vsyncpa [#allocation4], 1 }
 0x23d   :  { %626 = vsyncpa [#allocation10], 1 }

</bundles_post_ra>
